<compile_context>
chip_gen: v7x
topology: tpu7x:2x2x1
jax: 0.10.0
libtpu: 0.0.40
codegen_flags: <defaults>
</compile_context>

<pallas_src>
import functools

import jax
import jax.numpy as jnp
from jax.experimental import pallas as pl
from jax.experimental.pallas import tpu as pltpu

LANE = 128
SUBLANE = 8
DEFAULT_TM = 1024     # rows per grid step (512-2048 is the HBM-roofline sweet spot)
NUM_CORES = 2         # leading "parallel" axis; uses both TCs on v7x, harmless on 1-TC chips


def _focal_bce_kernel(preds_ref, labels_ref, sum_ref, cnt_ref, *,
                      ignore_index: float, rows_valid: int, tm: int,
                      nb_half: int):
    """Accumulate masked BCE-with-logits partial sums into (8,128) output slabs."""
    c = pl.program_id(0)     # core split (parallel)
    i = pl.program_id(1)     # reduction axis (arbitrary)

    @pl.when(i == 0)
    def _():
        sum_ref[...] = jnp.zeros_like(sum_ref)
        cnt_ref[...] = jnp.zeros_like(cnt_ref)

    # Upcast in-kernel (inputs may arrive as bf16 / uint8 etc.).
    x = preds_ref[...].astype(jnp.float32)      # logits   (tm, 128)
    z = labels_ref[...].astype(jnp.float32)     # targets  (tm, 128)

    # Tail masking: global row id of every element in this block (unclamped,
    # so blocks past the end of the array contribute exactly zero).
    row0 = (c * nb_half + i) * tm
    row_ids = jax.lax.broadcasted_iota(jnp.int32, (tm, LANE), 0) + row0
    in_bounds = row_ids < rows_valid

    valid = jnp.logical_and(z != jnp.float32(ignore_index), in_bounds)

    # Numerically stable BCE with logits:
    #   l = max(x, 0) - x*z + log(1 + exp(-|x|))
    bce = jnp.maximum(x, 0.0) - x * z + jnp.log1p(jnp.exp(-jnp.abs(x)))

    contrib = jnp.where(valid, bce, 0.0)        # where() also kills NaNs from OOB garbage
    ones = jnp.where(valid, 1.0, 0.0)

    # (tm,128) -> (tm/8, 8, 128) is tile-aligned; sum over axis 0 is pure VPU adds.
    sum_ref[...] = sum_ref[...] + contrib.reshape(tm // SUBLANE, SUBLANE, LANE).sum(axis=0)
    cnt_ref[...] = cnt_ref[...] + ones.reshape(tm // SUBLANE, SUBLANE, LANE).sum(axis=0)


def _row_granularity(*dtypes):
    """Row multiple required so blocks respect native (sublane, 128) packing."""
    g = SUBLANE
    for dt in dtypes:
        bits = jnp.dtype(dt).itemsize * 8
        g = max(g, SUBLANE * 32 // bits)   # f32 -> 8, bf16 -> 16, int8 -> 32
    return g


def focal_loss(preds, labels, *, alpha=0.25, gamma=2.0, ignore_index=255.0):
    flat_p = preds.reshape(-1)
    flat_l = labels.reshape(-1)
    n = flat_p.shape[0]

    gran = _row_granularity(flat_p.dtype, flat_l.dtype)
    tile_elems = gran * LANE
    pad = (-n) % tile_elems
    if pad:
        # TODO(synk): rare tail path (numel not a multiple of gran*128); jnp.pad
        # materializes a copy of both tensors. All other tail handling is done
        # in-kernel via row masking, so no pad to the block size is needed.
        flat_p = jnp.pad(flat_p, (0, pad))
        flat_l = jnp.pad(flat_l, (0, pad),
                         constant_values=jnp.asarray(ignore_index, dtype=flat_l.dtype))

    rows = (n + pad) // LANE                   # multiple of `gran`
    p2d = flat_p.reshape(rows, LANE)           # contiguous reshape: no data movement
    l2d = flat_l.reshape(rows, LANE)

    tm = min(DEFAULT_TM, rows)                 # multiple of `gran`
    nb_total = pl.cdiv(rows, tm)               # last block may be partial (masked in-kernel)
    nb_half = pl.cdiv(nb_total, NUM_CORES)
    grid = (NUM_CORES, nb_half)

    def in_map(c, i):
        # Clamp the DMA block index; the kernel's row mask (unclamped) zeroes
        # any contribution from blocks past the end of the array.
        return (jnp.minimum(c * nb_half + i, nb_total - 1), 0)

    kernel = functools.partial(
        _focal_bce_kernel,
        ignore_index=float(ignore_index),
        rows_valid=rows, tm=tm, nb_half=nb_half)

    psum, pcnt = pl.pallas_call(
        kernel,
        out_shape=(
            jax.ShapeDtypeStruct((NUM_CORES * SUBLANE, LANE), jnp.float32),
            jax.ShapeDtypeStruct((NUM_CORES * SUBLANE, LANE), jnp.float32),
        ),
        grid_spec=pltpu.PrefetchScalarGridSpec(
            num_scalar_prefetch=0,
            grid=grid,
            in_specs=[
                pl.BlockSpec((tm, LANE), in_map),
                pl.BlockSpec((tm, LANE), in_map),
            ],
            out_specs=(
                pl.BlockSpec((SUBLANE, LANE), lambda c, i: (c, 0)),
                pl.BlockSpec((SUBLANE, LANE), lambda c, i: (c, 0)),
            ),
        ),
        compiler_params=pltpu.CompilerParams(
            dimension_semantics=("parallel", "arbitrary"),
            vmem_limit_bytes=32 * 1024 * 1024),
    )(p2d, l2d)

    # Tiny epilogue in plain JAX: cross-lane reduce of the partial slabs plus
    # the scalar focal transform.
    bce_sum = jnp.sum(psum)
    valid_cnt = jnp.sum(pcnt)
    mean_bce = bce_sum / valid_cnt
    logpt = -mean_bce
    pt = jnp.exp(logpt)
    return -(1.0 - pt) ** gamma * alpha * logpt


def focal_loss_ref(preds, labels, *, alpha=0.25, gamma=2.0, ignore_index=255.0):
    """Pure-JAX reference mirroring the PyTorch forward."""
    preds = preds.astype(jnp.float32).reshape(-1)
    labels = labels.astype(jnp.float32).reshape(-1)
    mask = (labels != ignore_index).astype(jnp.float32)
    bce = jnp.maximum(preds, 0.0) - preds * labels + jnp.log1p(
        jnp.exp(-jnp.abs(preds)))
    mean_bce = jnp.sum(bce * mask) / jnp.sum(mask)
    logpt = -mean_bce
    pt = jnp.exp(logpt)
    return -(1.0 - pt) ** gamma * alpha * logpt


if __name__ == "__main__":
    key = jax.random.PRNGKey(0)
    k1, k2, k3 = jax.random.split(key, 3)

    N, C, H, W = 2, 4, 16, 16
    preds = jax.random.normal(k1, (N, C, H, W), dtype=jnp.float32)

    # Binary targets in {0, 1}, with ~10% of positions set to ignore_index=255.
    labels = jax.random.bernoulli(k2, 0.5, (N, C, H, W)).astype(jnp.float32)
    ignore_mask = jax.random.bernoulli(k3, 0.1, (N, C, H, W))
    labels = jnp.where(ignore_mask, jnp.float32(255.0), labels)

    loss = jax.block_until_ready(focal_loss(preds, labels))
    ref = jax.block_until_ready(focal_loss_ref(preds, labels))

    assert jnp.allclose(loss, ref, rtol=1e-5, atol=1e-6), (loss, ref)
    print("KERNEL_OK")
</pallas_src>

<mosaic_0001>
module attributes {stable_mosaic.version = 11 : i64} {
  func.func @_focal_bce_kernel(%arg0: i32, %arg1: i32, %arg2: memref<16x128xf32, #tpu.memory_space<vmem>>, %arg3: memref<16x128xf32, #tpu.memory_space<vmem>>, %arg4: memref<8x128xf32, #tpu.memory_space<vmem>>, %arg5: memref<8x128xf32, #tpu.memory_space<vmem>>) attributes {dimension_semantics = [#tpu.dimension_semantics<parallel>, #tpu.dimension_semantics<arbitrary>], iteration_bounds = array<i64: 2, 1>, scalar_prefetch = 0 : i64, scratch_operands = 0 : i64, tpu.core_type = #tpu.core_type<tc>, window_params = [{transform_indices = @transform_0, window_bounds = array<i64: 16, 128>}, {transform_indices = @transform_1, window_bounds = array<i64: 16, 128>}, {transform_indices = @transform_2, window_bounds = array<i64: 8, 128>}, {transform_indices = @transform_3, window_bounds = array<i64: 8, 128>}]} {
    %c0_i32 = arith.constant 0 : i32
    %0 = arith.cmpi eq, %arg1, %c0_i32 : i32
    %1 = arith.extui %0 : i1 to i32
    %c0_i32_0 = arith.constant 0 : i32
    %2 = arith.cmpi ne, %1, %c0_i32_0 : i32
    scf.if %2 {
      %cst_20 = arith.constant 0.000000e+00 : f32
      %41 = vector.broadcast %cst_20 : f32 to vector<8x128xf32>
      %c0_21 = arith.constant 0 : index
      %c0_22 = arith.constant 0 : index
      %42 = vector.load %arg4[%c0_21, %c0_22] : memref<8x128xf32, #tpu.memory_space<vmem>>, vector<8x128xf32>
      tpu.vector_store %arg4[%c0_21, %c0_22], %41 {strides = array<i32>} : memref<8x128xf32, #tpu.memory_space<vmem>>, vector<8x128xf32>,
      %cst_23 = arith.constant 0.000000e+00 : f32
      %43 = vector.broadcast %cst_23 : f32 to vector<8x128xf32>
      %c0_24 = arith.constant 0 : index
      %c0_25 = arith.constant 0 : index
      %44 = vector.load %arg5[%c0_24, %c0_25] : memref<8x128xf32, #tpu.memory_space<vmem>>, vector<8x128xf32>
      tpu.vector_store %arg5[%c0_24, %c0_25], %43 {strides = array<i32>} : memref<8x128xf32, #tpu.memory_space<vmem>>, vector<8x128xf32>,
    } else {
    }
    %c0 = arith.constant 0 : index
    %c0_1 = arith.constant 0 : index
    %3 = vector.load %arg2[%c0, %c0_1] : memref<16x128xf32, #tpu.memory_space<vmem>>, vector<16x128xf32>
    %c0_2 = arith.constant 0 : index
    %c0_3 = arith.constant 0 : index
    %4 = vector.load %arg3[%c0_2, %c0_3] : memref<16x128xf32, #tpu.memory_space<vmem>>, vector<16x128xf32>
    %c1_i32 = arith.constant 1 : i32
    %5 = arith.muli %arg0, %c1_i32 : i32
    %6 = arith.addi %5, %arg1 : i32
    %c16_i32 = arith.constant 16 : i32
    %7 = arith.muli %6, %c16_i32 : i32
    %8 = tpu.iota {dimensions = array<i32: 0>} : vector<16x128xi32>
    %9 = vector.broadcast %7 : i32 to vector<16x128xi32>
    %10 = arith.addi %8, %9 : vector<16x128xi32>
    %c16_i32_4 = arith.constant 16 : i32
    %11 = vector.broadcast %c16_i32_4 : i32 to vector<16x128xi32>
    %12 = arith.cmpi slt, %10, %11 : vector<16x128xi32>
    %cst = arith.constant 2.550000e+02 : f32
    %13 = vector.broadcast %cst : f32 to vector<16x128xf32>
    %14 = arith.cmpf one, %4, %13 : vector<16x128xf32>
    %15 = arith.andi %14, %12 : vector<16x128xi1>
    %cst_5 = arith.constant 0.000000e+00 : f32
    %16 = vector.broadcast %cst_5 : f32 to vector<16x128xf32>
    %17 = arith.maximumf %3, %16 : vector<16x128xf32>
    %18 = arith.mulf %3, %4 : vector<16x128xf32>
    %19 = arith.subf %17, %18 : vector<16x128xf32>
    %20 = math.absf %3 : vector<16x128xf32>
    %cst_6 = arith.constant 0.000000e+00 : f32
    %21 = vector.broadcast %cst_6 : f32 to vector<16x128xf32>
    %22 = arith.subf %21, %20 : vector<16x128xf32>
    %23 = math.exp %22 : vector<16x128xf32>
    %24 = math.log1p %23 : vector<16x128xf32>
    %25 = arith.addf %19, %24 : vector<16x128xf32>
    %cst_7 = arith.constant 0.000000e+00 : f32
    %26 = vector.broadcast %cst_7 : f32 to vector<16x128xf32>
    %27 = arith.select %15, %25, %26 : vector<16x128xi1>, vector<16x128xf32>
    %cst_8 = arith.constant 1.000000e+00 : f32
    %cst_9 = arith.constant 0.000000e+00 : f32
    %28 = vector.broadcast %cst_8 : f32 to vector<16x128xf32>
    %29 = vector.broadcast %cst_9 : f32 to vector<16x128xf32>
    %30 = arith.select %15, %28, %29 : vector<16x128xi1>, vector<16x128xf32>
    %c0_10 = arith.constant 0 : index
    %c0_11 = arith.constant 0 : index
    %31 = vector.load %arg4[%c0_10, %c0_11] : memref<8x128xf32, #tpu.memory_space<vmem>>, vector<8x128xf32>
    %32 = vector.shape_cast %27 : vector<16x128xf32> to vector<2x8x128xf32>
    %cst_12 = arith.constant dense<0.000000e+00> : vector<8x128xf32>
    %33 = vector.multi_reduction <add>, %32, %cst_12 [0] : vector<2x8x128xf32> to vector<8x128xf32>
    %34 = arith.addf %31, %33 : vector<8x128xf32>
    %c0_13 = arith.constant 0 : index
    %c0_14 = arith.constant 0 : index
    %35 = vector.load %arg4[%c0_13, %c0_14] : memref<8x128xf32, #tpu.memory_space<vmem>>, vector<8x128xf32>
    tpu.vector_store %arg4[%c0_13, %c0_14], %34 {strides = array<i32>} : memref<8x128xf32, #tpu.memory_space<vmem>>, vector<8x128xf32>,
    %c0_15 = arith.constant 0 : index
    %c0_16 = arith.constant 0 : index
    %36 = vector.load %arg5[%c0_15, %c0_16] : memref<8x128xf32, #tpu.memory_space<vmem>>, vector<8x128xf32>
    %37 = vector.shape_cast %30 : vector<16x128xf32> to vector<2x8x128xf32>
    %cst_17 = arith.constant dense<0.000000e+00> : vector<8x128xf32>
    %38 = vector.multi_reduction <add>, %37, %cst_17 [0] : vector<2x8x128xf32> to vector<8x128xf32>
    %39 = arith.addf %36, %38 : vector<8x128xf32>
    %c0_18 = arith.constant 0 : index
    %c0_19 = arith.constant 0 : index
    %40 = vector.load %arg5[%c0_18, %c0_19] : memref<8x128xf32, #tpu.memory_space<vmem>>, vector<8x128xf32>
    tpu.vector_store %arg5[%c0_18, %c0_19], %39 {strides = array<i32>} : memref<8x128xf32, #tpu.memory_space<vmem>>, vector<8x128xf32>,
    return
  }
  func.func @transform_0(%arg0: i32, %arg1: i32) -> (i32, i32) {
    %c1_i32 = arith.constant 1 : i32
    %0 = arith.muli %arg0, %c1_i32 : i32
    %1 = arith.addi %0, %arg1 : i32
    %c0_i32 = arith.constant 0 : i32
    %2 = arith.minsi %1, %c0_i32 : i32
    %c0_i32_0 = arith.constant 0 : i32
    %c0_i32_1 = arith.constant 0 : i32
    return %2, %c0_i32_0 : i32, i32
  }
  func.func @transform_1(%arg0: i32, %arg1: i32) -> (i32, i32) {
    %c1_i32 = arith.constant 1 : i32
    %0 = arith.muli %arg0, %c1_i32 : i32
    %1 = arith.addi %0, %arg1 : i32
    %c0_i32 = arith.constant 0 : i32
    %2 = arith.minsi %1, %c0_i32 : i32
    %c0_i32_0 = arith.constant 0 : i32
    %c0_i32_1 = arith.constant 0 : i32
    return %2, %c0_i32_0 : i32, i32
  }
  func.func @transform_2(%arg0: i32, %arg1: i32) -> (i32, i32) {
    %c0_i32 = arith.constant 0 : i32
    %c0_i32_0 = arith.constant 0 : i32
    return %arg0, %c0_i32 : i32, i32
  }
  func.func @transform_3(%arg0: i32, %arg1: i32) -> (i32, i32) {
    %c0_i32 = arith.constant 0 : i32
    %c0_i32_0 = arith.constant 0 : i32
    return %arg0, %c0_i32 : i32, i32
  }
}

</mosaic_0001>

<bundles_post_ra>
// kernel: tpu_custom_call.1
= control target key start
LH: loop header
LB: loop body
LE: loop exit
PB: predicated region body
PF: predicated region fallthrough
CT: control target
= control target key end

     0   :  { %9 = vsyncpa [#allocation3], 0  ;;  %s1147_s0 = inlined_call_operand.hbm [shape: f32[16,128], index: 0, kind: input, shape index: {}]   ;;  %s1148_s1 = inlined_call_operand.hbm [shape: f32[16,128], index: 1, kind: input, shape index: {}]   ;;  %s1149_s2 = inlined_call_operand.hbm [shape: f32[16,128], index: 2, kind: output, shape index: {0}]   ;;  %s1150_s3 = inlined_call_operand.hbm [shape: f32[16,128], index: 3, kind: output, shape index: {1}]  }
   0x1   :  { %11 = vsyncpa [#allocation3 + $0x1], 0 }
   0x2   :  { %12 = vsyncpa [#allocation6], 0 }
   0x3   :  { %14 = vsyncpa [#allocation6 + $0x1], 0 }
   0x4   :  { %15 = vsyncpa [#allocation4], 0 }
   0x5   :  { %17 = vsyncpa [#allocation4 + $0x1], 0 }
   0x6   :  { %18 = vsyncpa [#allocation9], 0 }
   0x7   :  { %20 = vsyncpa [#allocation9 + $0x1], 0  ;;  %s872_s12 = smov 0   ;;  %s874_s13 = smov 0  }
   0x8   :  { %s876_s14 = smov 0   ;;  %s878_s15 = smov 0  }
   0x9   :  { %s880_s16 = smov 0   ;;  %s882_s17 = smov 0  }
   0xa   :  { %s884_s18 = smov 0   ;;  %s886_s19 = smov 0  }
   0xb LB: > { %s513_s20 = sadd.s32 4294967295, %s843_s19   ;;  %s514_s21 = sadd.s32 4294967294, %s843_s19   ;;  %s843_s19 = sphi %s886_s19, %s26_s19   ;;  %s839_s18 = sphi %s884_s18, %s1173_s18   ;;  %s835_s17 = sphi %s882_s17, %s1172_s17   ;;  %s831_s16 = sphi %s880_s16, %s1137_s16   ;;  %s827_s15 = sphi %s878_s15, %s1171_s15   ;;  %s823_s14 = sphi %s876_s14, %s1170_s14   ;;  %s819_s13 = sphi %s874_s13, %s1169_s13   ;;  %s815_s12 = sphi %s872_s12, %s1168_s12  }
   0xc   : > { %s38_s22 = sadd.s32 1, %s839_s18  ;;  %p812_p1 = scmp.ne.s32.totalorder %s831_s16, 0 }
   0xd   : > { %p40_p0 = scmp.ge.s32.totalorder %s38_s22, 2  ;;  %p59_p2 = scmp.eq.s32.totalorder %s843_s19, 0 }
   0xe   : > { %p64_p3 = scmp.ne.s32.totalorder %s831_s16, %s827_s15  ;;  %p65_p5 = scmp.eq.s32.totalorder %s513_s20, 0 }
   0xf   : > { %s1175_s22 = smov (%p40_p0, %s38_s22), 0  ;;  %p918_p4 = por %p812_p1, %p59_p2 }
  0x10   : > { %p922_p6 = por %p65_p5, %p64_p3  ;;  %s106_s25 = ssub.s32 %s839_s18, %s1175_s22 }
  0x11   : > { %p107_p7 = scmp.eq.s32.totalorder %s106_s25, 0  ;;  %s109_s26 = sadd.s32 1, %s823_s14 }
  0x12   : > { %s1154_s24 = scalar_select %p922_p6, 1, 0 }
  0x13   : > { %s930_s27 = scalar_select %p107_p7, %s823_s14, %s109_s26  }
  0x14   : > { %p119_p8 = scmp.ne.s32.totalorder %s823_s14, %s819_s13  ;;  %p120_p9 = scmp.eq.s32.totalorder %s513_s20, 1 }
  0x15   : > { %p125_p10 = scmp.ne.s32.totalorder %s819_s13, %s815_s12  ;;  %p126_p11 = scmp.eq.s32.totalorder %s514_s21, 1 }
  0x16   : > { %p936_p12 = por %p120_p9, %p119_p8  ;;  %p559_p1 = scmp.lt.s32.totalorder %s843_s19, 2 }
  0x17   : > { %p941_p0 = por %p126_p11, %p125_p10  ;;  %s845_s30 = smov [#allocation2]  }
  0x18   : > { %s1155_s28 = scalar_select %p936_p12, 1, 0 }
  0x19   : > { %s1156_s29 = scalar_select %p941_p0, 1, 0 }
  0x1a   : > { %s186_s4 = sshll.u32 %s845_s30, 4  ;;  %p948_p2 = pnand %p559_p1, %p918_p4  ;;  %s187_s4 = int_to_ptr.vmem [resolvable:$true] %s186_s4 }
  0x1b   : > { %s644_s8 = scalar_lea.hbm %s1147_s0, 256 }
  0x1c   : > { %p645_p3 = scmp.ne.s32.totalorder %s1147_s0, %s644_s8  ;;  %p646_p5 = pneg %p948_p2 }
  0x1d   : > { %p651_p8 = scmp.lt.u32.totalorder %s644_s8, %s644_s8  ;;  %p653_p9 = scmp.lt.u32.totalorder %s644_s8, %s1147_s0 }
  0x1e   : > { %p647_p7 = pnand %p646_p5, %p645_p3 }
  0x1f   : > { %p654_p10 = por %p653_p9, %p651_p8 }
  0x20   : > { %p648_p4 = pneg %p647_p7 }
  0x22   : > { %p655_p11 = pnand %p654_p10, %p648_p4 }
  0x24   : > { %658 = shalt.err (!%p655_p11)
}
  0x25   : > { %s659_s20 = scalar_lea.vmem %s187_s4, 256  ;;  %s666_s21 = scalar_lea.vmem %s187_s4, 512 }
  0x26   : > { %p660_p1 = scmp.ne.s32.totalorder %s187_s4, %s659_s20  ;;  %p667_p12 = scmp.lt.s32.totalorder %s187_s4, %s187_s4 }
  0x27   : > { %p668_p6 = scmp.lt.s32.totalorder %s666_s21, %s659_s20 }
  0x28   : > { %p662_p13 = pnand %p660_p1, %p646_p5 }
  0x29   : > { %p669_p3 = por %p668_p6, %p667_p12 }
  0x2a   : > { %p663_p0 = pneg %p662_p13 }
  0x2c   : > { %p670_p7 = pnand %p669_p3, %p663_p0 }
  0x2e   : > { %673 = shalt.err (!%p670_p7)
}
  0x2f   : > { %s846_s23 = smov 128   ;;  %s847_s25 = smov 8  }
  0x30   : > { %548 = dma.hbm_to_vmem [thread:$0]  (!%p948_p2), %s1147_s0, 256, %s187_s4, [#allocation3], %s846_s23, %s846_s23, %s847_s25  }
  0x31   : > { %p523_p13 = scmp.ge.s32.totalorder %s843_s19, 1  ;;  %p218_p4 = scmp.lt.s32.totalorder %s843_s19, 3 }
  0x32   : > { %s848_s7 = smov [#allocation5]   ;;  %s674_s11 = scalar_lea.hbm %s1148_s1, 256 }
  0x33   : > { %p979_p8 = pnand %p523_p13, %p218_p4  ;;  %s210_s8 = sshll.u32 %s848_s7, 4  ;;  %s211_s8 = int_to_ptr.vmem [resolvable:$true] %s210_s8 }
  0x34   : > { %p675_p6 = scmp.ne.s32.totalorder %s1148_s1, %s674_s11  ;;  %p681_p9 = scmp.lt.u32.totalorder %s674_s11, %s674_s11 }
  0x35   : > { %s1158_s6 = scalar_select %p979_p8, 1, 0 }
  0x36   : > { %p677_p12 = pnand %p675_p6, %p646_p5  ;;  %p683_p10 = scmp.lt.u32.totalorder %s674_s11, %s1148_s1 }
  0x38   : > { %p678_p0 = pneg %p677_p12  ;;  %p684_p11 = por %p683_p10, %p681_p9 }
  0x3a   : > { %p685_p1 = pnand %p684_p11, %p678_p0 }
  0x3c   : > { %688 = shalt.err (!%p685_p1)
}
  0x3d   : > { %s689_s26 = scalar_lea.vmem %s211_s8, 256  ;;  %s696_s30 = scalar_lea.vmem %s211_s8, 512 }
  0x3e   : > { %p690_p3 = scmp.ne.s32.totalorder %s211_s8, %s689_s26  ;;  %p697_p4 = scmp.lt.s32.totalorder %s211_s8, %s211_s8 }
  0x3f   : > { %p698_p8 = scmp.lt.s32.totalorder %s696_s30, %s689_s26 }
  0x40   : > { %p692_p7 = pnand %p690_p3, %p646_p5 }
  0x41   : > { %p699_p6 = por %p698_p8, %p697_p4 }
  0x42   : > { %p693_p13 = pneg %p692_p7 }
  0x44   : > { %p700_p12 = pnand %p699_p6, %p693_p13 }
  0x46   : > { %703 = shalt.err (!%p700_p12)
}
  0x47   : > { %551 = dma.hbm_to_vmem [thread:$0]  (!%p948_p2), %s1148_s1, 256, %s211_s8, [#allocation6], %s846_s23, %s846_s23, %s847_s25  }
  0x48   : > { %p1159_p0 = scmp.ne.s32.totalorder %s1158_s6, 0 }
  0x49   : > { %s224_s10 = sand.u32 (!%p1159_p0), 1, %s831_s16   ;;  %p1160_p5 = scmp.ne.s32.totalorder (!%p1159_p0), %s1154_s24, 0 }
  0x4a   : > { %222 = sbr.rel (%p1159_p0) target bundleno = 147 (0x93), region = 28  ;;  %s524_s11 = sshll.u32 (!%p1159_p0), %s224_s10, 4 }
  0x4b   : > { %s225_s15 = scalar_lea.sflag (!%p1159_p0), [#allocation3], %s224_s10  ;;  %s228_s20 = scalar_lea.vmem (!%p1159_p0), [#allocation2], %s524_s11 }
  0x51   : > { %797 = dma.done.wait (%p1160_p5), %s225_s15, 256  }
  0x52   : > { %799 = vsyncadd (%p1160_p5), %s225_s15, 4294967040  ;;  %s234_s5 = scalar_lea.sflag [#allocation6], %s224_s10  ;;  %s237_s4 = scalar_lea.vmem [#allocation5], %s524_s11 }
  0x53   : > { %801 = dma.done.wait (%p1160_p5), %s234_s5, 256  }
  0x54   : > { %803 = vsyncadd (%p1160_p5), %s234_s5, 4294967040  ;;  %s528_s23 = sshll.u32 %s835_s17, 4  ;;  %v290_v0 = vlaneseq  ;;  %s1019_s25 = sand.u32 1, %s819_s13   ;;  %v1022_v6 = vld [vmem:[%s228_s20] sm:$0xff]  ;;  %v1024_v7 = vld [vmem:[%s228_s20 + $0x8] sm:$0xff]  ;;  %v849_v14 = vmov 0.0  }
  0x55   : > { %v293_v1 = vstv %s528_s23  ;;  %s526_s6 = sshll.u32 %s1019_s25, 3  ;;  %v286_v8 = vld [vmem:[%s237_s4] sm:$0xff]  ;;  %v1026_v9 = vld [vmem:[%s237_s4 + $0x8] sm:$0xff]  ;;  %v308_v11 = vand.u32 2147483647, %v1022_v6  ;;  %s531_s24 = sshll.u32 %s835_s17, 7 }
  0x56   : > { %v291_v2 = vshrl.u32 %v290_v0, 7  ;;  %vm298_vm2 = vcmp.ne.f32.partialorder %v286_v8, 255.0  ;;  %vm299_vm3 = vcmp.ne.f32.partialorder %v1026_v9, 255.0  ;;  %v309_v13 = vand.u32 2147483647, %v1024_v7  ;;  %s269_s8 = scalar_lea.vmem [#allocation8], %s526_s6  ;;  %s1051_s7 = scalar_lea.hbm %s1150_s3, %s531_s24 }
  0x57   : > { %v310_v16 = vsub.f32 0.0, %v308_v11  ;;  %s380_s21 = sshll.u32 %s269_s8, 4  ;;  %s354_s9 = scalar_lea.sflag [#allocation9], %s1019_s25  ;;  %s1053_s21 = int_to_ptr.vmem [resolvable:$true] %s380_s21 }
  0x58   : > { %v292_v3 = vadd.s32 8, %v291_v2  ;;  %v294_v4 = vadd.s32 %v293_v1, %v291_v2  ;;  %v311_v18 = vsub.f32 0.0, %v309_v13  ;;  %s704_s10 = scalar_lea.vmem %s1053_s21, 128  ;;  %p1165_p8 = scmp.ne.s32.totalorder %s1155_s28, 0 }
  0x59   : > { %v312_v20 = vmul.f32 1.442695, %v310_v16  ;;  %p705_p2 = scmp.ne.s32.totalorder %s1053_s21, %s704_s10  ;;  %s850_s11 = smov [#allocation8]  }
  0x5a   : > { %v295_v5 = vadd.s32 %v293_v1, %v292_v3  ;;  %vm296_vm0 = vcmp.lt.s32.totalorder %v294_v4, 16  ;;  %v314_v21 = vmul.f32 1.442695, %v311_v18  ;;  %s708_s15 = sshll.u32 %s850_s11, 4  ;;  %s709_s15 = int_to_ptr.vmem [resolvable:$false] %s708_s15 }
  0x5b   : > { %vm1029_vm4 = vmand %vm298_vm2, %vm296_vm0  ;;  %636 = vpow2.f32 %v312_v20  ;;  %p706_p9 = pnand %p705_p2, %p1165_p8  ;;  %s710_s20 = scalar_lea.vmem %s709_s15, 256 }
  0x5c   : > { %vm297_vm1 = vcmp.lt.s32.totalorder %v295_v5, 16  ;;  %v338_v15 = vsel %vm1029_vm4, 1.0, %v849_v14  ;;  %638 = vpow2.f32 %v314_v21  ;;  %p711_p11 = scmp.lt.s32.totalorder %s1053_s21, %s709_s15  ;;  %p712_p1 = scmp.lt.s32.totalorder %s710_s20, %s704_s10 }
  0x5d   : > { %vm1034_vm5 = vmand %vm299_vm3, %vm297_vm1  ;;  %p707_p10 = pneg %p706_p9 }
  0x5e   : > { %v339_v17 = vsel %vm1034_vm5, 1.0, %v849_v14  ;;  %p713_p3 = por %p712_p1, %p711_p11 }
  0x5f   : > { %v345_v19 = vadd.f32 %v339_v17, %v338_v15 }
  0x60   : > { %p714_p7 = pnand %p713_p3, %p707_p10 }
  0x61   : > { %347 = vst [vmem:[%s269_s8] sm:$0xff] %v345_v19 }
  0x62   : > { %717 = shalt.err (!%p714_p7)
}
  0x63   : > { %s718_s5 = scalar_lea.hbm %s1051_s7, 128  ;;  %s722_s8 = scalar_lea.hbm %s1150_s3, 256 }
  0x64   : > { %p719_p13 = scmp.ne.s32.totalorder %s1051_s7, %s718_s5  ;;  %p723_p12 = scmp.lt.u32.totalorder %s1051_s7, %s1150_s3 }
  0x65   : > { %p724_p0 = scmp.lt.u32.totalorder %s722_s8, %s718_s5  ;;  %p726_p2 = scmp.lt.u32.totalorder %s718_s5, %s1051_s7 }
  0x66   : > { %p720_p4 = pnand %p719_p13, %p1165_p8 }
  0x67   : > { %p725_p5 = por %p724_p0, %p723_p12 }
  0x68   : > { %p721_p6 = pneg %p720_p4 }
  0x69   : > { %p727_p9 = por %p726_p2, %p725_p5 }
  0x6b   : > { %p728_p10 = pnand %p727_p9, %p721_p6 }
  0x6d   : > { %731 = shalt.err (!%p728_p10)
}
  0x6e   : > { %542 = dma.vmem_to_hbm [thread:$0]  (%p1165_p8), %s1053_s21, 128, %s1051_s7, %s354_s9   ;;  %v637_v22 = vpop.eup %636  ;;  %v302_v29 = vmax.f32 %v1022_v6, 0.0  ;;  %v304_v30 = vmul.f32 %v286_v8, %v1022_v6  ;;  %v303_v33 = vmax.f32 %v1024_v7, 0.0  ;;  %v305_v34 = vmul.f32 %v1026_v9, %v1024_v7 }
  0x6f   : > { %v639_v23 = vpop.eup %638  ;;  %v316_v24 = vadd.f32 1.0, %v637_v22  ;;  %v319_v26 = vmul.f32 -0.5, %v637_v22  ;;  %v322_v31 = vand.u32 2147483647, %v637_v22  ;;  %s262_s21 = scalar_lea.vmem [#allocation7], %s526_s6  ;;  %s1093_s11 = scalar_lea.hbm %s1149_s2, %s531_s24 }
  0x70   : > { %v325_v25 = vadd.f32 1.0, %v639_v23  ;;  %v328_v27 = vmul.f32 -0.5, %v639_v23  ;;  %v331_v35 = vand.u32 2147483647, %v639_v23  ;;  %v306_v38 = vsub.f32 %v302_v29, %v304_v30  ;;  %s367_s7 = sshll.u32 %s262_s21, 4  ;;  %s349_s15 = scalar_lea.sflag [#allocation4], %s1019_s25  ;;  %s1095_s7 = int_to_ptr.vmem [resolvable:$true] %s367_s7 }
  0x71   : > { %640 = vlog2.f32 %v316_v24  ;;  %v320_v28 = vadd.f32 1.0, %v319_v26  ;;  %vm323_vm6 = vcmp.lt.f32.partialorder %v322_v31, 0.0004427343  ;;  %v307_v41 = vsub.f32 %v303_v33, %v305_v34  ;;  %s732_s20 = scalar_lea.vmem %s1095_s7, 128  ;;  %s851_s6 = smov [#allocation7]  }
  0x72   : > { %642 = vlog2.f32 %v325_v25  ;;  %v329_v32 = vadd.f32 1.0, %v328_v27  ;;  %vm332_vm7 = vcmp.lt.f32.partialorder %v331_v35, 0.0004427343  ;;  %p733_p11 = scmp.ne.s32.totalorder %s1095_s7, %s732_s20  ;;  %s736_s5 = sshll.u32 %s851_s6, 4  ;;  %s737_s5 = int_to_ptr.vmem [resolvable:$false] %s736_s5 }
  0x73   : > { %v321_v36 = vmul.f32 %v637_v22, %v320_v28  ;;  %s738_s17 = scalar_lea.vmem %s737_s5, 256  ;;  %p739_p7 = scmp.lt.s32.totalorder %s1095_s7, %s737_s5 }
  0x74   : > { %v330_v39 = vmul.f32 %v639_v23, %v329_v32  ;;  %p734_p1 = pnand %p733_p11, %p1165_p8  ;;  %p740_p13 = scmp.lt.s32.totalorder %s738_s17, %s732_s20 }
  0x76   : > { %p735_p3 = pneg %p734_p1  ;;  %p741_p4 = por %p740_p13, %p739_p7 }
  0x78   : > { %p742_p6 = pnand %p741_p4, %p735_p3 }
  0x7b   : > { %v641_v37 = vpop.eup %640 }
  0x7c   : > { %v643_v40 = vpop.eup %642  ;;  %v318_v42 = vmul.f32 0.6931472, %v641_v37 }
  0x7d   : > { %v327_v43 = vmul.f32 0.6931472, %v643_v40 }
  0x7e   : > { %v324_v44 = vsel %vm323_vm6, %v321_v36, %v318_v42 }
  0x7f   : > { %v333_v45 = vsel %vm332_vm7, %v330_v39, %v327_v43  ;;  %v334_v46 = vadd.f32 %v324_v44, %v306_v38 }
  0x80   : > { %v335_v47 = vadd.f32 %v333_v45, %v307_v41 }
  0x81   : > { %v336_v48 = vsel %vm1029_vm4, %v334_v46, 0.0 }
  0x82   : > { %v337_v49 = vsel %vm1034_vm5, %v335_v47, 0.0 }
  0x83   : > { %v341_v50 = vadd.f32 %v337_v49, %v336_v48 }
  0x85   : > { %343 = vst [vmem:[%s262_s21] sm:$0xff] %v341_v50 }
  0x86   : > { %745 = shalt.err (!%p742_p6)
}
  0x87   : > { %s746_s25 = scalar_lea.hbm %s1093_s11, 128  ;;  %s750_s23 = scalar_lea.hbm %s1149_s2, 256 }
  0x88   : > { %p747_p12 = scmp.ne.s32.totalorder %s1093_s11, %s746_s25  ;;  %p751_p2 = scmp.lt.u32.totalorder %s1093_s11, %s1149_s2 }
  0x89   : > { %p752_p9 = scmp.lt.u32.totalorder %s750_s23, %s746_s25  ;;  %p754_p11 = scmp.lt.u32.totalorder %s746_s25, %s1093_s11 }
  0x8a   : > { %p748_p0 = pnand %p747_p12, %p1165_p8 }
  0x8b   : > { %p753_p10 = por %p752_p9, %p751_p2 }
  0x8c   : > { %p749_p5 = pneg %p748_p0 }
  0x8d   : > { %p755_p1 = por %p754_p11, %p753_p10 }
  0x8f   : > { %p756_p3 = pnand %p755_p1, %p749_p5 }
  0x91   : > { %759 = shalt.err (!%p756_p3)
}
  0x92   : > { %541 = dma.vmem_to_hbm [thread:$0]  (%p1165_p8), %s1095_s7, 128, %s1093_s11, %s349_s15  }
  0x93 PF: > { %s392_s30 = sand.u32 1, %s815_s12   ;;  %p1166_p7 = scmp.ne.s32.totalorder %s1156_s29, 0 }
  0x94   : > { %p1167_p13 = scmp.ge.s32.totalorder %s843_s19, 2  ;;  %s393_s21 = scalar_lea.sflag [#allocation4], %s392_s30 }
  0x96   : > { %p553_p4 = pnand %p1167_p13, %p1166_p7 }
  0x98   : > { %805 = dma.done.wait (!%p553_p4), %s393_s21, 128  }
  0x99   : > { %807 = vsyncadd (!%p553_p4), %s393_s21, 4294967168  ;;  %s402_s9 = scalar_lea.sflag [#allocation9], %s392_s30 }
  0x9a   : > { %809 = dma.done.wait (!%p553_p4), %s402_s9, 128  }
  0x9b   : > { %811 = vsyncadd (!%p553_p4), %s402_s9, 4294967168  ;;  %s26_s19 = sadd.s32 1, %s843_s19   ;;  %s1168_s12 = smov %s819_s13 }
  0x9c   : > { %p23_p6 = scmp.ge.s32.totalorder %s26_s19, 4   ;;  %s1169_s13 = smov %s823_s14 }
  0x9d   : > { %s1170_s14 = smov %s930_s27  ;;  %s1171_s15 = smov %s831_s16 }
  0x9e   : > { %s1137_s16 = smov 0   ;;  %s1172_s17 = smov %s839_s18 }
  0x9f   : > { %s1173_s18 = smov %s1175_s22  ;;  %25 = sbr.rel (!%p23_p6) target bundleno = 11 (0xb), region = 107 }
  0xa6   :  { %407 = vsyncpa [#allocation3], 1 }
  0xa7   :  { %409 = vsyncpa [#allocation3 + $0x1], 1 }
  0xa8   :  { %410 = vsyncpa [#allocation6], 1 }
  0xa9   :  { %412 = vsyncpa [#allocation6 + $0x1], 1 }
  0xaa   :  { %413 = vsyncpa [#allocation4], 1 }
  0xab   :  { %415 = vsyncpa [#allocation4 + $0x1], 1 }
  0xac   :  { %416 = vsyncpa [#allocation9], 1 }
  0xad   :  { %418 = vsyncpa [#allocation9 + $0x1], 1 }

</bundles_post_ra>
